<compile_context>
chip_gen: v6e
topology: v6e:2x2x1
jax: 0.10.0
libtpu: 0.0.40
codegen_flags: <defaults>
</compile_context>

<pallas_src>
import math

import jax
import jax.numpy as jnp
from jax import lax
from jax.experimental import pallas as pl
from jax.experimental.pallas import tpu as pltpu


# ---------------------------------------------------------------------------
# Tile-size helpers (keep tiles divisors of the array extents, 8-aligned)
# ---------------------------------------------------------------------------
def _pick_tile(n: int, target: int) -> int:
    """Largest multiple-of-8 divisor of n that is <= target (or n itself)."""
    if n <= target:
        return n
    t = target - (target % 8)
    while t >= 8:
        if n % t == 0:
            return t
        t -= 8
    return n


# ---------------------------------------------------------------------------
# Kernel 1: fused QKV projection  x @ [Wq | Wk | Wv], scale folded into Q
# ---------------------------------------------------------------------------
def _make_qkv_kernel(d_out: int, inv_scale: float):
    def kernel(x_ref, w_ref, q_ref, k_ref, v_ref):
        # x_ref: (tm, D_in)   w_ref: (D_in, 3*D_out)
        # Native-dtype operands (no f32 upcast); MXU accumulates in f32.
        qkv = jnp.dot(x_ref[...], w_ref[...],
                      preferred_element_type=jnp.float32)          # (tm, 3*D_out)
        q_ref[...] = (qkv[:, :d_out] * inv_scale).astype(q_ref.dtype)
        k_ref[...] = qkv[:, d_out:2 * d_out].astype(k_ref.dtype)
        v_ref[...] = qkv[:, 2 * d_out:3 * d_out].astype(v_ref.dtype)
    return kernel


def _qkv_projection(x, w_qkv, d_out, inv_scale):
    B, T, D_in = x.shape
    n = B * T
    x_flat = x.reshape(n, D_in)          # collapse batch: one row-tiled grid
    tm = _pick_tile(n, 256)
    itemsize = jnp.dtype(x.dtype).itemsize

    cost = pl.CostEstimate(
        flops=2 * n * D_in * 3 * d_out,
        transcendentals=0,
        bytes_accessed=(n * D_in + D_in * 3 * d_out + 3 * n * d_out) * itemsize,
    )
    out_sds = jax.ShapeDtypeStruct((n, d_out), x.dtype)
    q, k, v = pl.pallas_call(
        _make_qkv_kernel(d_out, inv_scale),
        out_shape=(out_sds, out_sds, out_sds),
        grid_spec=pltpu.PrefetchScalarGridSpec(
            num_scalar_prefetch=0,
            grid=(n // tm,),
            in_specs=[
                pl.BlockSpec((tm, D_in), lambda i: (i, 0)),
                pl.BlockSpec((D_in, 3 * d_out), lambda i: (0, 0)),
            ],
            out_specs=[
                pl.BlockSpec((tm, d_out), lambda i: (i, 0)),
                pl.BlockSpec((tm, d_out), lambda i: (i, 0)),
                pl.BlockSpec((tm, d_out), lambda i: (i, 0)),
            ],
        ),
        compiler_params=pltpu.CompilerParams(dimension_semantics=("parallel",)),
        cost_estimate=cost,
    )(x_flat, w_qkv)
    return (q.reshape(B, T, d_out),
            k.reshape(B, T, d_out),
            v.reshape(B, T, d_out))


# ---------------------------------------------------------------------------
# Kernel 2: flash attention with online softmax (causal)
# ---------------------------------------------------------------------------
def _make_flash_kernel(tq: int, tk: int):
    def kernel(q_ref, k_ref, v_ref, o_ref, m_sc, l_sc, acc_sc):
        qi = pl.program_id(1)
        ki = pl.program_id(2)

        @pl.when(ki == 0)
        def _init():
            m_sc[...] = jnp.full_like(m_sc, -jnp.inf)
            l_sc[...] = jnp.zeros_like(l_sc)
            acc_sc[...] = jnp.zeros_like(acc_sc)

        # Causal block skip: KV blocks strictly above the diagonal contribute 0.
        @pl.when(ki * tk <= qi * tq + (tq - 1))
        def _compute():
            q = q_ref[0]                                    # (tq, D); scale pre-folded
            k = k_ref[0]                                    # (tk, D)
            # Q @ K^T by contracting the last dim of both (no explicit transpose).
            s = lax.dot_general(q, k, (((1,), (1,)), ((), ())),
                                preferred_element_type=jnp.float32)  # (tq, tk)
            row = qi * tq + lax.broadcasted_iota(jnp.int32, (tq, tk), 0)
            col = ki * tk + lax.broadcasted_iota(jnp.int32, (tq, tk), 1)
            s = jnp.where(col > row, -jnp.inf, s)

            m_prev = m_sc[...]                              # (tq, 1)
            m_new = jnp.maximum(m_prev, jnp.max(s, axis=-1, keepdims=True))
            alpha = jnp.exp(m_prev - m_new)
            p = jnp.exp(s - m_new)                          # (tq, tk) f32
            l_sc[...] = alpha * l_sc[...] + jnp.sum(p, axis=-1, keepdims=True)
            # Cast probabilities to V's dtype before the MXU matmul.
            acc_sc[...] = alpha * acc_sc[...] + jnp.dot(
                p.astype(v_ref.dtype), v_ref[0],
                preferred_element_type=jnp.float32)
            m_sc[...] = m_new

        @pl.when(ki == pl.num_programs(2) - 1)
        def _finalize():
            # Softmax denominator via the EUP approximate reciprocal (free slot).
            o_ref[0] = (acc_sc[...] *
                        pl.reciprocal(l_sc[...], approx=True)).astype(o_ref.dtype)

    return kernel


def _flash_attention(q, k, v):
    B, T, D = q.shape
    tq = _pick_tile(T, 128)
    tk = _pick_tile(T, 256)
    itemsize = jnp.dtype(q.dtype).itemsize

    # Rough per-step VMEM working set (double-buffered q/k/v + out, f32 scratch);
    # raise the scoped limit only if needed (large T on v6e), cap well under HW.
    vmem_need = 2 * (2 * tq * D + 2 * tk * D) * itemsize + (2 * tq + tq * D) * 4
    cp_kwargs = dict(dimension_semantics=("parallel", "parallel", "arbitrary"))
    if vmem_need > 32 * 1024 * 1024:
        cp_kwargs["vmem_limit_bytes"] = min(2 * vmem_need, 100 * 1024 * 1024)

    cost = pl.CostEstimate(
        flops=4 * B * T * T * D,            # QK^T + PV (advisory; causality halves it)
        transcendentals=B * T * T,          # exp
        bytes_accessed=4 * B * T * D * itemsize,
    )
    # TODO(synk): when D < 128 for real workloads, pad/fuse heads so the output
    # last dim is lane-dense (multiple of 128) to avoid masked partial stores.
    return pl.pallas_call(
        _make_flash_kernel(tq, tk),
        out_shape=jax.ShapeDtypeStruct((B, T, D), q.dtype),
        grid_spec=pltpu.PrefetchScalarGridSpec(
            num_scalar_prefetch=0,
            grid=(B, T // tq, T // tk),
            in_specs=[
                pl.BlockSpec((1, tq, D), lambda b, i, j: (b, i, 0)),
                pl.BlockSpec((1, tk, D), lambda b, i, j: (b, j, 0)),
                pl.BlockSpec((1, tk, D), lambda b, i, j: (b, j, 0)),
            ],
            out_specs=pl.BlockSpec((1, tq, D), lambda b, i, j: (b, i, 0)),
            scratch_shapes=[
                pltpu.VMEM((tq, 1), jnp.float32),   # running max
                pltpu.VMEM((tq, 1), jnp.float32),   # running denominator
                pltpu.VMEM((tq, D), jnp.float32),   # output accumulator
            ],
        ),
        compiler_params=pltpu.CompilerParams(**cp_kwargs),
        cost_estimate=cost,
    )(q, k, v)


# ---------------------------------------------------------------------------
# Public wrapper matching MiaSelfAttention.forward (eval mode)
# ---------------------------------------------------------------------------
def mia_self_attention(x, wq, wk, wv, output_dim):
    """x: (B, T, D_in); wq/wk/wv: (D_in, D_out). Returns (B, T, D_out)."""
    d_out = wq.shape[1]
    inv_scale = 1.0 / math.sqrt(output_dim)
    # Fused QKV weight: one MXU matmul / one weight DMA instead of three.
    w_qkv = jnp.concatenate([wq, wk, wv], axis=1)          # (D_in, 3*D_out)
    q, k, v = _qkv_projection(x, w_qkv, d_out, inv_scale)
    # TODO(synk): nn.Dropout on the attention weights is identity in eval mode;
    # training-mode stochastic dropout is omitted here.
    return _flash_attention(q, k, v)


def reference(x, wq, wk, wv, output_dim):
    """Pure-JAX reference mirroring the PyTorch forward (eval mode)."""
    q = x @ wq
    k = x @ wk
    v = x @ wv
    s = q @ jnp.swapaxes(k, 1, 2)
    T = x.shape[1]
    mask = jnp.triu(jnp.ones((T, T), bool), k=1)
    s = jnp.where(mask[None], -jnp.inf, s)
    p = jax.nn.softmax(s / math.sqrt(output_dim), axis=-1)
    return p @ v


if __name__ == "__main__":
    # Small shapes consistent with the module's forward:
    #   batch=2, seq (total_tokens)=8, input_dim=32, output_dim=32, context_length=8
    B, T, D_in, D_out = 2, 8, 32, 32

    key = jax.random.PRNGKey(0)
    kx, kq, kk, kv = jax.random.split(key, 4)

    x = jax.random.normal(kx, (B, T, D_in), dtype=jnp.float32)

    # Deterministic nn.Linear-style init (uniform ±1/sqrt(fan_in)), no bias (qkv_bias=False).
    bound = 1.0 / math.sqrt(D_in)
    wq = jax.random.uniform(kq, (D_in, D_out), jnp.float32, -bound, bound)
    wk = jax.random.uniform(kk, (D_in, D_out), jnp.float32, -bound, bound)
    wv = jax.random.uniform(kv, (D_in, D_out), jnp.float32, -bound, bound)

    out = mia_self_attention(x, wq, wk, wv, D_out)
    out = jax.block_until_ready(out)

    ref = reference(x, wq, wk, wv, D_out)
    assert out.shape == (B, T, D_out)
    # Tolerance accounts for the EUP approximate reciprocal in the softmax
    # normalization (and bf16 operands if used); otherwise the pipeline is f32.
    assert jnp.allclose(out, ref, atol=5e-3, rtol=5e-3), "mismatch vs reference"

    print("KERNEL_OK")
</pallas_src>

<mosaic_0001>
module attributes {stable_mosaic.version = 11 : i64} {
  func.func @kernel(%arg0: i32, %arg1: memref<16x32xf32, #tpu.memory_space<vmem>>, %arg2: memref<32x96xf32, #tpu.memory_space<vmem>>, %arg3: memref<16x32xf32, #tpu.memory_space<vmem>>, %arg4: memref<16x32xf32, #tpu.memory_space<vmem>>, %arg5: memref<16x32xf32, #tpu.memory_space<vmem>>) attributes {dimension_semantics = [#tpu.dimension_semantics<parallel>], iteration_bounds = array<i64: 1>, scalar_prefetch = 0 : i64, scratch_operands = 0 : i64, tpu.core_type = #tpu.core_type<tc>, window_params = [{transform_indices = @transform_0, window_bounds = array<i64: 16, 32>}, {pipeline_mode = #tpu.pipeline_mode<synchronous>, transform_indices = @transform_1, window_bounds = array<i64: 32, 96>}, {transform_indices = @transform_2, window_bounds = array<i64: 16, 32>}, {transform_indices = @transform_3, window_bounds = array<i64: 16, 32>}, {transform_indices = @transform_4, window_bounds = array<i64: 16, 32>}]} {
    %c0 = arith.constant 0 : index
    %c0_0 = arith.constant 0 : index
    %0 = vector.load %arg1[%c0, %c0_0] : memref<16x32xf32, #tpu.memory_space<vmem>>, vector<16x32xf32>
    %c0_1 = arith.constant 0 : index
    %c0_2 = arith.constant 0 : index
    %1 = vector.load %arg2[%c0_1, %c0_2] : memref<32x96xf32, #tpu.memory_space<vmem>>, vector<32x96xf32>
    %cst = arith.constant dense<0.000000e+00> : vector<16x96xf32>
    %2 = tpu.matmul %0, %1, %cst {dimension_numbers = #tpu.dot_dimension_numbers<[1], [0], [0], [1], [0, 0, 1, 1], [], []>} : vector<16x32xf32>, vector<32x96xf32>, vector<16x96xf32> -> vector<16x96xf32>
    %3 = vector.extract_strided_slice %2 {offsets = [0, 0], sizes = [16, 32], strides = [1, 1]} : vector<16x96xf32> to vector<16x32xf32>
    %cst_3 = arith.constant 0.176776692 : f32
    %4 = vector.broadcast %cst_3 : f32 to vector<16x32xf32>
    %5 = arith.mulf %3, %4 : vector<16x32xf32>
    %c0_4 = arith.constant 0 : index
    %c0_5 = arith.constant 0 : index
    %6 = vector.load %arg3[%c0_4, %c0_5] : memref<16x32xf32, #tpu.memory_space<vmem>>, vector<16x32xf32>
    tpu.vector_store %arg3[%c0_4, %c0_5], %5 {strides = array<i32>} : memref<16x32xf32, #tpu.memory_space<vmem>>, vector<16x32xf32>,
    %7 = vector.extract_strided_slice %2 {offsets = [0, 32], sizes = [16, 32], strides = [1, 1]} : vector<16x96xf32> to vector<16x32xf32>
    %c0_6 = arith.constant 0 : index
    %c0_7 = arith.constant 0 : index
    %8 = vector.load %arg4[%c0_6, %c0_7] : memref<16x32xf32, #tpu.memory_space<vmem>>, vector<16x32xf32>
    tpu.vector_store %arg4[%c0_6, %c0_7], %7 {strides = array<i32>} : memref<16x32xf32, #tpu.memory_space<vmem>>, vector<16x32xf32>,
    %9 = vector.extract_strided_slice %2 {offsets = [0, 64], sizes = [16, 32], strides = [1, 1]} : vector<16x96xf32> to vector<16x32xf32>
    %c0_8 = arith.constant 0 : index
    %c0_9 = arith.constant 0 : index
    %10 = vector.load %arg5[%c0_8, %c0_9] : memref<16x32xf32, #tpu.memory_space<vmem>>, vector<16x32xf32>
    tpu.vector_store %arg5[%c0_8, %c0_9], %9 {strides = array<i32>} : memref<16x32xf32, #tpu.memory_space<vmem>>, vector<16x32xf32>,
    return
  }
  func.func @transform_0(%arg0: i32) -> (i32, i32) {
    %c0_i32 = arith.constant 0 : i32
    %c0_i32_0 = arith.constant 0 : i32
    return %arg0, %c0_i32 : i32, i32
  }
  func.func @transform_1(%arg0: i32) -> (i32, i32) {
    %c0_i32 = arith.constant 0 : i32
    %c0_i32_0 = arith.constant 0 : i32
    %c0_i32_1 = arith.constant 0 : i32
    return %c0_i32, %c0_i32_0 : i32, i32
  }
  func.func @transform_2(%arg0: i32) -> (i32, i32) {
    %c0_i32 = arith.constant 0 : i32
    %c0_i32_0 = arith.constant 0 : i32
    return %arg0, %c0_i32 : i32, i32
  }
  func.func @transform_3(%arg0: i32) -> (i32, i32) {
    %c0_i32 = arith.constant 0 : i32
    %c0_i32_0 = arith.constant 0 : i32
    return %arg0, %c0_i32 : i32, i32
  }
  func.func @transform_4(%arg0: i32) -> (i32, i32) {
    %c0_i32 = arith.constant 0 : i32
    %c0_i32_0 = arith.constant 0 : i32
    return %arg0, %c0_i32 : i32, i32
  }
}

</mosaic_0001>

<bundles_post_ra>
// kernel: tpu_custom_call.1
= control target key start
LH: loop header
LB: loop body
LE: loop exit
PB: predicated region body
PF: predicated region fallthrough
CT: control target
= control target key end

     0   :  { %10 = vsyncpa [#allocation3], 0  ;;  %s411_s0 = inlined_call_operand.hbm [shape: f32[16,32], index: 0, kind: input, shape index: {}]   ;;  %s412_s1 = inlined_call_operand.hbm [shape: f32[32,96], index: 1, kind: input, shape index: {}]   ;;  %s413_s2 = inlined_call_operand.hbm [shape: f32[16,32], index: 2, kind: output, shape index: {0}]   ;;  %s414_s3 = inlined_call_operand.hbm [shape: f32[16,32], index: 3, kind: output, shape index: {1}]   ;;  %s415_s4 = inlined_call_operand.hbm [shape: f32[16,32], index: 4, kind: output, shape index: {2}]  }
   0x1   :  { %11 = vsyncpa [#allocation6], 0 }
   0x2   :  { %12 = vsyncpa [#allocation4], 0 }
   0x3   :  { %13 = vsyncpa [#allocation9], 0  ;;  %s339_s15 = smov [#allocation2]  }
   0x4   :  { %s19_s16 = sshll.u32 %s339_s15, 4  ;;  %s20_s16 = int_to_ptr.vmem [resolvable:$true] %s19_s16 }
   0x5   :  { %s239_s17 = scalar_lea.vmem %s20_s16, 256  ;;  %p244_p1 = scmp.lt.s32.totalorder %s20_s16, %s20_s16 }
   0x6   :  { %p240_p0 = scmp.ne.s32.totalorder %s20_s16, %s239_s17  ;;  %p245_p2 = scmp.lt.s32.totalorder %s239_s17, %s239_s17 }
   0x8   :  { %p246_p3 = por %p245_p2, %p244_p1 }
   0xa   :  { %p247_p4 = pnand %p246_p3, %p240_p0 }
   0xc   :  { %250 = shalt.err (!%p247_p4)
}
   0xd   :  { %s340_s18 = smov 128   ;;  %s341_s19 = smov 8  }
   0xe   :  { %25 = dma.hbm_to_vmem [thread:$0]  %s411_s0, 256, %s20_s16, [#allocation3], %s340_s18, %s340_s18, %s341_s19  }
   0xf   :  { %s342_s22 = smov [#allocation5]  }
  0x10   :  { %s31_s23 = sshll.u32 %s342_s22, 4  ;;  %s32_s23 = int_to_ptr.vmem [resolvable:$true] %s31_s23 }
  0x11   :  { %s259_s24 = scalar_lea.vmem %s32_s23, 512  ;;  %p264_p6 = scmp.lt.s32.totalorder %s32_s23, %s32_s23 }
  0x12   :  { %p260_p5 = scmp.ne.s32.totalorder %s32_s23, %s259_s24  ;;  %p265_p7 = scmp.lt.s32.totalorder %s259_s24, %s259_s24 }
  0x14   :  { %p266_p8 = por %p265_p7, %p264_p6 }
  0x16   :  { %p267_p9 = pnand %p266_p8, %p260_p5 }
  0x18   :  { %270 = shalt.err (!%p267_p9)
}
  0x19   :  { %37 = dma.hbm_to_vmem [thread:$0]  %s412_s1, 512, %s32_s23, [#allocation6], %s340_s18, %s340_s18, %s341_s19  }
  0x1a   :  { %331 = dma.done.wait [#allocation3], 256  }
  0x1b   :  { %332 = vsyncadd [#allocation3], 4294967040 }
  0x1c   :  { %333 = dma.done.wait [#allocation6], 512  }
  0x1d   :  { %334 = vsyncadd [#allocation6], 4294966784  ;;  %vm50_vm0 = vcmask 261120   ;;  %v49_v0 = vld [vmem:[#allocation5 + $0x18] sm:$0xff]  ;;  %v48_v1 = vld [vmem:[#allocation5 + $0x10] sm:$0xff]  ;;  %s343_s0 = smov [#allocation7]  }
  0x1e   :  { %211 = vmatprep.subr.mxu0 %v49_v0  ;;  %v44_v2 = vld [vmem:[#allocation2] sm:$0xff]  ;;  %v47_v3 = vld [vmem:[#allocation5 + $0x8] sm:$0xff]  ;;  %v46_v4 = vld [vmem:[#allocation5] sm:$0xff]  ;;  %s159_s1 = sshll.u32 %s343_s0, 4  ;;  %s344_s27 = smov 64   ;;  %s160_s1 = int_to_ptr.vmem [resolvable:$true] %s159_s1 }
  0x1f   :  { %212 = vmatpush3.msra.mxu0 %v49_v0  ;;  %219 = vmatprep.mubr.msk.f32.mxu0 %vm50_vm0, %v44_v2  ;;  %v45_v5 = vld [vmem:[#allocation2 + $0x8] sm:$0xff]  ;;  %s345_s28 = smov 96   ;;  %s271_s29 = scalar_lea.vmem %s160_s1, 256 }
  0x20   :  { %213 = vmatprep.subr.mxu0 %v48_v1  ;;  %p272_p10 = scmp.ne.s32.totalorder %s160_s1, %s271_s29  ;;  %p276_p11 = scmp.lt.s32.totalorder %s160_s1, %s160_s1 }
  0x21   :  { %214 = vmatpush3.msra.mxu0 %v48_v1  ;;  %p277_p12 = scmp.lt.s32.totalorder %s271_s29, %s271_s29 }
  0x22   :  { %215 = vmatprep.subr.mxu0 %v47_v3 }
  0x23   :  { %216 = vmatpush3.msra.mxu0 %v47_v3  ;;  %p278_p13 = por %p277_p12, %p276_p11 }
  0x24   :  { %217 = vmatprep.subr.mxu0 %v46_v4 }
  0x25   :  { %218 = vmatpush3.msra.mxu0 %v46_v4  ;;  %p279_p0 = pnand %p278_p13, %p272_p10 }
  0x26   :  { %220 = vmatmul.mubr.msk.f32.vlgmr.msra.gmra.mxu0 %vm50_vm0, %v45_v5 }
  0xe6   :  { %v221_v6 = vpop.f32.mrf.mxu0 }
  0xe7   :  { %v133_v7 = vmul.f32 0.17677669, %v221_v6 }
  0xe8   :  { %v123_v8 = vpop.f32.mrf.mxu0 }
  0xe9   :  { %135 = vst.msk [vmem:[#allocation7 + $0x8] sm:$0xff] %vm50_vm0, %v133_v7  ;;  %v132_v9 = vmul.f32 0.17677669, %v123_v8  ;;  %146 = vrot.lane.b32.xlu1 %v123_v8, %s344_s27  ;;  %138 = vrot.lane.b32.xlu0 %v123_v8, %s345_s28 }
  0xeb   :  { %134 = vst.msk [vmem:[#allocation7] sm:$0xff] %vm50_vm0, %v132_v9 }
  0xec   :  { %282 = shalt.err (!%p279_p0)
}
  0xed   :  { %165 = dma.vmem_to_hbm [thread:$0]  %s160_s1, 256, %s413_s2, [#allocation4], %s340_s18, %s340_s18, %s341_s19  }
  0xee   :  { %148 = vrot.lane.b32.xlu1 %v221_v6, %s344_s27  ;;  %140 = vrot.lane.b32.xlu0 %v221_v6, %s345_s28  ;;  %s346_s6 = smov [#allocation8]   ;;  %s347_s8 = smov [#allocation10]  }
  0xef   :  { %s171_s7 = sshll.u32 %s346_s6, 4  ;;  %s183_s9 = sshll.u32 %s347_s8, 4  ;;  %s172_s7 = int_to_ptr.vmem [resolvable:$true] %s171_s7  ;;  %s184_s9 = int_to_ptr.vmem [resolvable:$true] %s183_s9 }
  0xf0   :  { %s291_s2 = scalar_lea.vmem %s172_s7, 256  ;;  %p296_p2 = scmp.lt.s32.totalorder %s172_s7, %s172_s7 }
  0xf1   :  { %p292_p1 = scmp.ne.s32.totalorder %s172_s7, %s291_s2  ;;  %p297_p3 = scmp.lt.s32.totalorder %s291_s2, %s291_s2 }
  0xf3   :  { %p298_p4 = por %p297_p3, %p296_p2 }
  0xf5   :  { %p299_p5 = pnand %p298_p4, %p292_p1 }
 0x15b   :  { %v147_v10 = vpop.permute.xlu1 %146  ;;  %v139_v11 = vpop.permute.xlu0 %138 }
 0x15c   :  { %152 = vst.msk [vmem:[#allocation10] sm:$0xff] %vm50_vm0, %v147_v10  ;;  %144 = vst.msk [vmem:[#allocation8] sm:$0xff] %vm50_vm0, %v139_v11 }
 0x160   :  { %v149_v12 = vpop.permute.xlu1 %148  ;;  %v141_v13 = vpop.permute.xlu0 %140 }
 0x161   :  { %153 = vst.msk [vmem:[#allocation10 + $0x8] sm:$0xff] %vm50_vm0, %v149_v12  ;;  %145 = vst.msk [vmem:[#allocation8 + $0x8] sm:$0xff] %vm50_vm0, %v141_v13 }
 0x162   :  { %302 = shalt.err (!%p299_p5)
}
 0x163   :  { %177 = dma.vmem_to_hbm [thread:$0]  %s172_s7, 256, %s414_s3, [#allocation9], %s340_s18, %s340_s18, %s341_s19  }
 0x164   :  { %s311_s12 = scalar_lea.vmem %s184_s9, 256  ;;  %p316_p7 = scmp.lt.s32.totalorder %s184_s9, %s184_s9 }
 0x165   :  { %p312_p6 = scmp.ne.s32.totalorder %s184_s9, %s311_s12  ;;  %p317_p8 = scmp.lt.s32.totalorder %s311_s12, %s311_s12 }
 0x167   :  { %p318_p9 = por %p317_p8, %p316_p7 }
 0x169   :  { %p319_p10 = pnand %p318_p9, %p312_p6 }
 0x16b   :  { %322 = shalt.err (!%p319_p10)
}
 0x16c   :  { %189 = dma.vmem_to_hbm [thread:$0]  %s184_s9, 256, %s415_s4, [#allocation9], %s340_s18, %s340_s18, %s341_s19  }
 0x16d   :  { %335 = dma.done.wait [#allocation4], 256  }
 0x16e   :  { %336 = vsyncadd [#allocation4], 4294967040 }
 0x16f   :  { %337 = dma.done.wait [#allocation9], 512  }
 0x170   :  { %338 = vsyncadd [#allocation9], 4294966784 }
 0x171   :  { %199 = vsyncpa [#allocation3], 1 }
 0x172   :  { %200 = vsyncpa [#allocation6], 1 }
 0x173   :  { %201 = vsyncpa [#allocation4], 1 }
 0x174   :  { %202 = vsyncpa [#allocation9], 1 }

</bundles_post_ra>
